<compile_context>
chip_gen: v5e
topology: v5e:2x2
jax: 0.10.0
libtpu: 0.0.40
codegen_flags: <defaults>
</compile_context>

<pallas_src>
import jax
import jax.numpy as jnp
from jax.experimental import pallas as pl
from jax.experimental.pallas import tpu as pltpu


def _vmem_limit_bytes():
    """Per-generation VMEM budget (leave headroom for Mosaic scratch)."""
    cap = None
    try:
        cap = getattr(pltpu.get_tpu_info(), "vmem_capacity_bytes", None)
    except Exception:
        cap = None
    if not cap or cap <= 0:
        cap = 64 * 1024 * 1024  # v7x per-TC floor: safe on every generation
    return int(min(cap - 8 * 1024 * 1024, 112 * 1024 * 1024))


def _pick_tile_n(N, tile_n, resident_bytes, per_row_bytes, budget_bytes):
    """N-tile size: multiple of 16 (bf16 sublane packing), prefer TN | N."""
    if N <= max(tile_n, 16):
        tn = N                      # single full-extent tile -> no constraint
    else:
        tn = max(16, (tile_n // 16) * 16)
        # Prefer a tile that divides N (no masked ragged tail), but don't drop
        # below half the requested tile just to get divisibility.
        for cand in range(tn, max(tn // 2, 16) - 1, -16):
            if N % cand == 0:
                tn = cand
                break
    # Shrink (keeping 16-row alignment) until the streamed buffers fit VMEM.
    while tn > 16 and resident_bytes + tn * per_row_bytes > budget_bytes:
        tn = max(16, (tn // 2) // 16 * 16)
    return tn


def _patch_embed_kernel(x_ref, w_ref, b_ref, pos_ref, o_ref):
    # x_ref:   (1, TN, K)  flattened patch tile (compute dtype)
    # w_ref:   (K, E)      projection weight   (grid-invariant -> VMEM resident)
    # b_ref:   (1, E)      projection bias     (grid-invariant)
    # pos_ref: (1, TN, E)  positional-embedding tile (storage dtype)
    # o_ref:   (1, TN, E)  output tile
    acc = jnp.dot(x_ref[0], w_ref[...], preferred_element_type=jnp.float32)
    acc = acc + b_ref[...].astype(jnp.float32) + pos_ref[0].astype(jnp.float32)
    o_ref[0] = acc.astype(o_ref.dtype)


def patch_embedding_forward(x, weight, bias, pos_embeddings, patch_size, *,
                            compute_dtype=jnp.bfloat16, out_dtype=None,
                            tile_n=512):
    """Pallas-backed equivalent of PatchEmbedding.forward.

    x:              (B, C, H, W)        NCHW, like PyTorch
    weight:         (E, K)              torch Linear weight, K = C*p*p
    bias:           (E,)                torch Linear bias
    pos_embeddings: (B, N, E) or (1, N, E); N = (H/p)*(W/p)
    compute_dtype:  matmul operand dtype (bf16 default; f32 is explicit opt-in)
    """
    B, C, H, W = x.shape
    p = patch_size
    hh, ww = H // p, W // p
    N = hh * ww
    E, K = weight.shape
    assert K == C * p * p
    assert pos_embeddings.shape[1:] == (N, E)
    assert pos_embeddings.shape[0] in (1, B)
    pos_batch = pos_embeddings.shape[0]
    if out_dtype is None:
        out_dtype = pos_embeddings.dtype

    # --- XLA glue: cast FIRST (half-width rearrange), then einops rearrange
    #     'b c (h p1) (w p2) -> b (h w) (c p1 p2)'.
    xc = x.astype(compute_dtype)
    patches = xc.reshape(B, C, hh, p, ww, p).transpose(0, 2, 4, 1, 3, 5)
    patches = patches.reshape(B, N, K)
    w = weight.T.astype(compute_dtype)          # (K, E)
    b = bias.reshape(1, E)                      # keep storage dtype

    in_b = jnp.dtype(compute_dtype).itemsize
    pos_b = jnp.dtype(pos_embeddings.dtype).itemsize
    out_b = jnp.dtype(out_dtype).itemsize
    bias_b = jnp.dtype(b.dtype).itemsize

    vmem_limit = _vmem_limit_bytes()
    resident = 2 * K * E * in_b + 2 * E * bias_b            # dbl-buffered weight/bias
    per_row = 2 * (K * in_b + E * pos_b + E * out_b)        # dbl-buffered streams
    TN = _pick_tile_n(N, tile_n, resident, per_row, int(vmem_limit * 0.9))
    num_n = pl.cdiv(N, TN)

    # Grid order: batch innermost when pos is (1, N, E) so the same pos tile is
    # reused (not re-DMA'd) across the batch; otherwise batch outermost.
    broadcast_pos = (pos_batch == 1 and B > 1)
    if broadcast_pos:
        grid = (num_n, B)
        pat_idx = lambda n, b_: (b_, n, 0)
        pos_idx = lambda n, b_: (0, n, 0)
        out_idx = lambda n, b_: (b_, n, 0)
        res_idx = lambda n, b_: (0, 0)
    else:
        grid = (B, num_n)
        pat_idx = lambda b_, n: (b_, n, 0)
        pos_idx = lambda b_, n: (b_, n, 0)
        out_idx = lambda b_, n: (b_, n, 0)
        res_idx = lambda b_, n: (0, 0)

    cost = pl.CostEstimate(
        flops=2 * B * N * K * E,
        transcendentals=0,
        bytes_accessed=(B * N * K * in_b + K * E * in_b + E * bias_b
                        + pos_batch * N * E * pos_b + B * N * E * out_b))

    out = pl.pallas_call(
        _patch_embed_kernel,
        out_shape=jax.ShapeDtypeStruct((B, N, E), out_dtype),
        grid_spec=pltpu.PrefetchScalarGridSpec(
            num_scalar_prefetch=0,
            grid=grid,
            in_specs=[
                pl.BlockSpec((1, TN, K), pat_idx),   # patches tile (streamed)
                pl.BlockSpec((K, E), res_idx),       # weight (VMEM resident)
                pl.BlockSpec((1, E), res_idx),       # bias   (VMEM resident)
                pl.BlockSpec((1, TN, E), pos_idx),   # pos tile (streamed)
            ],
            out_specs=pl.BlockSpec((1, TN, E), out_idx),
        ),
        compiler_params=pltpu.CompilerParams(
            dimension_semantics=("parallel", "parallel"),  # v7x 2-TC sharding
            allow_input_fusion=[True, False, False, False],
            vmem_limit_bytes=vmem_limit),
        cost_estimate=cost,
    )(patches, w, b, pos_embeddings)
    return out


def reference_forward(x, weight, bias, pos_embeddings, patch_size):
    """Pure-JAX reference mirroring the PyTorch module."""
    B, C, H, W = x.shape
    p = patch_size
    hh, ww = H // p, W // p
    patches = x.reshape(B, C, hh, p, ww, p).transpose(0, 2, 4, 1, 3, 5)
    patches = patches.reshape(B, hh * ww, C * p * p)
    y = jnp.einsum("bnk,ek->bne", patches, weight,
                   precision=jax.lax.Precision.HIGHEST) + bias
    return y + pos_embeddings


if __name__ == "__main__":
    # Module hyperparameters (small, consistent with the forward semantics)
    batch_size = 2
    in_channels = 4
    patch_size = 4
    img_size = 16
    embedding_dim = 32

    num_patches = (img_size // patch_size) ** 2          # 16
    K = in_channels * patch_size * patch_size            # 64

    key = jax.random.PRNGKey(0)
    kx, kw, kb, kp, kx2, kp2 = jax.random.split(key, 6)

    x = jax.random.normal(kx, (batch_size, in_channels, img_size, img_size),
                          dtype=jnp.float32)
    bound = 1.0 / (K ** 0.5)
    weight = jax.random.uniform(kw, (embedding_dim, K), minval=-bound,
                                maxval=bound, dtype=jnp.float32)
    bias = jax.random.uniform(kb, (embedding_dim,), minval=-bound,
                              maxval=bound, dtype=jnp.float32)
    pos_embeddings = jax.random.normal(
        kp, (batch_size, num_patches, embedding_dim), dtype=jnp.float32)

    ref = reference_forward(x, weight, bias, pos_embeddings, patch_size)

    # 1) Default path: bf16 matmul operands (MXU-native on v5e/v6e/v7x),
    #    f32 accumulation + f32 bias/pos epilogue.
    out = jax.block_until_ready(
        patch_embedding_forward(x, weight, bias, pos_embeddings, patch_size))
    assert out.shape == (batch_size, num_patches, embedding_dim)
    assert jnp.allclose(out, ref, atol=5e-2, rtol=5e-2)

    # 2) Explicit f32 opt-in for exact patch embeddings.
    out_f32 = jax.block_until_ready(
        patch_embedding_forward(x, weight, bias, pos_embeddings, patch_size,
                                compute_dtype=jnp.float32))
    assert jnp.allclose(out_f32, ref, atol=1e-4, rtol=1e-4)

    # 3) Standard-ViT (1, N, E) broadcast positional table + multi-tile ragged
    #    N grid (N=49, TN=32 -> Pallas-masked trailing tile; pos tile reused
    #    across batch via the innermost-batch grid order).
    img2 = 28
    n2 = (img2 // patch_size) ** 2                        # 49
    x2 = jax.random.normal(kx2, (batch_size, in_channels, img2, img2),
                           dtype=jnp.float32)
    pos2 = jax.random.normal(kp2, (1, n2, embedding_dim), dtype=jnp.float32)
    ref2 = reference_forward(x2, weight, bias, pos2, patch_size)
    out2 = jax.block_until_ready(
        patch_embedding_forward(x2, weight, bias, pos2, patch_size,
                                compute_dtype=jnp.float32, tile_n=32))
    assert out2.shape == (batch_size, n2, embedding_dim)
    assert jnp.allclose(out2, ref2, atol=1e-4, rtol=1e-4)

    print("KERNEL_OK")
</pallas_src>

<mosaic_0001>
module attributes {stable_mosaic.version = 11 : i64} {
  func.func @_patch_embed_kernel(%arg0: i32, %arg1: i32, %arg2: memref<1x16x64xbf16, #tpu.memory_space<vmem>>, %arg3: memref<64x32xbf16, #tpu.memory_space<vmem>>, %arg4: memref<1x32xf32, #tpu.memory_space<vmem>>, %arg5: memref<1x16x32xf32, #tpu.memory_space<vmem>>, %arg6: memref<1x16x32xf32, #tpu.memory_space<vmem>>) attributes {dimension_semantics = [#tpu.dimension_semantics<parallel>, #tpu.dimension_semantics<parallel>], iteration_bounds = array<i64: 2, 1>, scalar_prefetch = 0 : i64, scratch_operands = 0 : i64, tpu.core_type = #tpu.core_type<tc>, window_params = [{transform_indices = @transform_0, window_bounds = array<i64: 1, 16, 64>}, {pipeline_mode = #tpu.pipeline_mode<synchronous>, transform_indices = @transform_1, window_bounds = array<i64: 64, 32>}, {pipeline_mode = #tpu.pipeline_mode<synchronous>, transform_indices = @transform_2, window_bounds = array<i64: 1, 32>}, {transform_indices = @transform_3, window_bounds = array<i64: 1, 16, 32>}, {transform_indices = @transform_4, window_bounds = array<i64: 1, 16, 32>}]} {
    %c0 = arith.constant 0 : index
    %c0_0 = arith.constant 0 : index
    %c0_1 = arith.constant 0 : index
    %0 = vector.load %arg2[%c0, %c0_0, %c0_1] : memref<1x16x64xbf16, #tpu.memory_space<vmem>>, vector<1x16x64xbf16>
    %1 = vector.shape_cast %0 : vector<1x16x64xbf16> to vector<16x64xbf16>
    %c0_2 = arith.constant 0 : index
    %c0_3 = arith.constant 0 : index
    %2 = vector.load %arg3[%c0_2, %c0_3] : memref<64x32xbf16, #tpu.memory_space<vmem>>, vector<64x32xbf16>
    %cst = arith.constant dense<0.000000e+00> : vector<16x32xf32>
    %3 = tpu.matmul %1, %2, %cst {dimension_numbers = #tpu.dot_dimension_numbers<[1], [0], [0], [1], [0, 0, 1, 1], [], []>} : vector<16x64xbf16>, vector<64x32xbf16>, vector<16x32xf32> -> vector<16x32xf32>
    %c0_4 = arith.constant 0 : index
    %c0_5 = arith.constant 0 : index
    %4 = vector.load %arg4[%c0_4, %c0_5] : memref<1x32xf32, #tpu.memory_space<vmem>>, vector<1x32xf32>
    %5 = vector.broadcast %4 : vector<1x32xf32> to vector<16x32xf32>
    %6 = arith.addf %3, %5 : vector<16x32xf32>
    %c0_6 = arith.constant 0 : index
    %c0_7 = arith.constant 0 : index
    %c0_8 = arith.constant 0 : index
    %7 = vector.load %arg5[%c0_6, %c0_7, %c0_8] : memref<1x16x32xf32, #tpu.memory_space<vmem>>, vector<1x16x32xf32>
    %8 = vector.shape_cast %7 : vector<1x16x32xf32> to vector<16x32xf32>
    %9 = arith.addf %6, %8 : vector<16x32xf32>
    %c0_9 = arith.constant 0 : index
    %c0_10 = arith.constant 0 : index
    %c0_11 = arith.constant 0 : index
    %10 = vector.load %arg6[%c0_9, %c0_10, %c0_11] : memref<1x16x32xf32, #tpu.memory_space<vmem>>, vector<1x16x32xf32>
    %11 = vector.shape_cast %10 : vector<1x16x32xf32> to vector<16x32xf32>
    %12 = vector.shape_cast %9 : vector<16x32xf32> to vector<1x16x32xf32>
    tpu.vector_store %arg6[%c0_9, %c0_10, %c0_11], %12 {strides = array<i32>} : memref<1x16x32xf32, #tpu.memory_space<vmem>>, vector<1x16x32xf32>,
    return
  }
  func.func @transform_0(%arg0: i32, %arg1: i32) -> (i32, i32, i32) {
    %c0_i32 = arith.constant 0 : i32
    %c0_i32_0 = arith.constant 0 : i32
    return %arg0, %arg1, %c0_i32 : i32, i32, i32
  }
  func.func @transform_1(%arg0: i32, %arg1: i32) -> (i32, i32) {
    %c0_i32 = arith.constant 0 : i32
    %c0_i32_0 = arith.constant 0 : i32
    %c0_i32_1 = arith.constant 0 : i32
    return %c0_i32, %c0_i32_0 : i32, i32
  }
  func.func @transform_2(%arg0: i32, %arg1: i32) -> (i32, i32) {
    %c0_i32 = arith.constant 0 : i32
    %c0_i32_0 = arith.constant 0 : i32
    %c0_i32_1 = arith.constant 0 : i32
    return %c0_i32, %c0_i32_0 : i32, i32
  }
  func.func @transform_3(%arg0: i32, %arg1: i32) -> (i32, i32, i32) {
    %c0_i32 = arith.constant 0 : i32
    %c0_i32_0 = arith.constant 0 : i32
    return %arg0, %arg1, %c0_i32 : i32, i32, i32
  }
  func.func @transform_4(%arg0: i32, %arg1: i32) -> (i32, i32, i32) {
    %c0_i32 = arith.constant 0 : i32
    %c0_i32_0 = arith.constant 0 : i32
    return %arg0, %arg1, %c0_i32 : i32, i32, i32
  }
}

</mosaic_0001>

<bundles_post_ra>
// kernel: tpu_custom_call.1
= control target key start
LH: loop header
LB: loop body
LE: loop exit
PB: predicated region body
PF: predicated region fallthrough
CT: control target
= control target key end

     0   :  { %9 = vsyncpa [#allocation3], 0  ;;  %s771_s0 = inlined_call_operand.vmem [shape: bf16[2,16,64], index: 0, kind: input, shape index: {}]   ;;  %s772_s1 = inlined_call_operand.vmem [shape: bf16[64,32], index: 1, kind: input, shape index: {}]   ;;  %s773_s2 = inlined_call_operand.vmem [shape: f32[1,32], index: 2, kind: input, shape index: {}]   ;;  %s774_s3 = inlined_call_operand.vmem [shape: f32[2,16,32], index: 3, kind: input, shape index: {}]   ;;  %s775_s4 = inlined_call_operand.hbm [shape: f32[2,16,32], index: 4, kind: output, shape index: {}]  }
   0x1   :  { %11 = vsyncpa [#allocation3 + $0x1], 0  ;;  %s656_s15 = smov 0   ;;  %s658_s16 = smov 0  }
   0x2   :  { %s660_s17 = smov 0   ;;  %s662_s18 = smov 0  }
   0x3   :  { %s664_s19 = smov 0   ;;  %s666_s20 = smov 0  }
   0x4 LB: > { %s447_s21 = sadd.s32 4294967295, %s627_s20   ;;  %s448_s22 = sadd.s32 4294967294, %s627_s20   ;;  %s627_s20 = sphi %s666_s20, %s17_s20   ;;  %s623_s19 = sphi %s664_s19, %s782_s19   ;;  %s619_s18 = sphi %s662_s18, %s781_s18   ;;  %s615_s17 = sphi %s660_s17, %s780_s17   ;;  %s611_s16 = sphi %s658_s16, %s779_s16   ;;  %s607_s15 = sphi %s656_s15, %s778_s15  }
   0x5   : > { %s29_s23 = sadd.s32 1, %s623_s19  ;;  %s136_s24 = sadd.s32 1, %s615_s17 }
   0x6   : > { %p31_p0 = scmp.ge.s32.totalorder %s29_s23, 2  ;;  %p146_p1 = scmp.ne.s32.totalorder %s615_s17, %s611_s16 }
   0x7   : > { %p147_p2 = scmp.eq.s32.totalorder %s447_s21, 1  ;;  %p152_p3 = scmp.ne.s32.totalorder %s611_s16, %s607_s15 }
   0x8   : > { %s784_s23 = smov (%p31_p0, %s29_s23), 0  ;;  %p153_p5 = scmp.eq.s32.totalorder %s448_s22, 1 }
   0x9   : > { %p696_p4 = por %p147_p2, %p146_p1  ;;  %s131_s26 = ssub.s32 %s623_s19, %s784_s23 }
   0xa   : > { %p451_p6 = scmp.ge.s32.totalorder %s627_s20, 1  ;;  %p134_p7 = scmp.eq.s32.totalorder %s131_s26, 0 }
   0xb   : > { %p703_p8 = por %p153_p5, %p152_p3  ;;  %p203_p9 = scmp.lt.s32.totalorder %s627_s20, 3 }
   0xc   : > { %s709_s28 = scalar_select %p134_p7, %s615_s17, %s136_s24  }
   0xd   : > { %p204_p10 = pnand %p451_p6, %p203_p9 }
   0xe   : > { %p243_p11 = scmp.lt.s32.totalorder (!%p204_p10), %s619_s18, 1  ;;  %s239_s24 = sand.u32 (!%p204_p10), 1, %s611_s16  }
   0xf   : > { %207 = sbr.rel (%p204_p10) target bundleno = 178 (0xb2), region = 36  ;;  %s452_s8 = sshll.u32 (!%p204_p10), %s239_s24, 4 }
  0x10   : > { %s490_s9 = sshll.u32 (!%p204_p10), %s619_s18, 4  ;;  %s241_s12 = scalar_lea.vmem (!%p204_p10), [#allocation2], %s452_s8 }
  0x11   : > { %s347_s13 = sshll.u32 (!%p204_p10), %s241_s12, 4  ;;  %s569_s5 = scalar_lea.hbm (!%p204_p10), %s775_s4, 32  ;;  %s348_s13 = int_to_ptr.vmem [resolvable:$true] %s347_s13 }
  0x14   : > { %v489_v0 = vld [vmem:[%s772_s1 + $0x18] sm:$0xff]  ;;  %v488_v1 = vld [vmem:[%s772_s1 + $0x10] sm:$0xff]  ;;  %s244_s7 = scalar_select %p243_p11, %s619_s18, 1  ;;  %v487_v2 = vld [vmem:[%s772_s1 + $0x8] sm:$0xff]  ;;  %vm307_vm0 = vcmask 523264   ;;  %vm329_vm1 = vcmask 261120  }
  0x15   : > { %315 = vmatpush.bf16.msra.mxu0 %v489_v0  ;;  %v486_v3 = vld [vmem:[%s772_s1] sm:$0xff] }
  0x16   : > { %s483_s10 = sshll.u32 %s244_s7, 3  ;;  %s484_s22 = sshll.u32 %s244_s7, 4  ;;  %v548_v5 = vld [vmem:[%s773_s2] ss:$0 sm:$0xff] }
  0x17   : > { %s250_s21 = scalar_lea.vmem %s771_s0, %s483_s10  ;;  %s260_s30 = scalar_lea.vmem %s774_s3, %s484_s22 }
  0x18   : > { %v485_v4 = vld [vmem:[%s250_s21] sm:$0xff]  ;;  %s346_s7 = scalar_lea.hbm %s775_s4, %s490_s9  ;;  %v326_v11 = vld [vmem:[%s260_s30 + $0x8] sm:$0xff]  ;;  %s333_s21 = scalar_lea.sflag [#allocation3], %s239_s24 }
  0x19   : > { %316 = vmatpush.bf16.msra.mxu0 %v488_v1  ;;  %v325_v7 = vld [vmem:[%s260_s30] sm:$0xff]  ;;  %s349_s14 = sshll.u32 %s346_s7, 4  ;;  %s350_s14 = int_to_ptr.hbm [resolvable:$true] %s349_s14 }
  0x1a   : > { %s563_s18 = sshra.s32 %s350_s14, 4  ;;  %s564_s18 = int_to_ptr.hbm [resolvable:$true] %s563_s18 }
  0x1b   : > { %s565_s22 = scalar_lea.hbm %s564_s18, 16  ;;  %p570_p1 = scmp.lt.s32.totalorder %s564_s18, %s775_s4 }
  0x1c   : > { %p566_p12 = scmp.ne.s32.totalorder %s564_s18, %s565_s22  ;;  %p571_p2 = scmp.lt.s32.totalorder %s569_s5, %s565_s22 }
  0x1d   : > { %317 = vmatpush.bf16.msra.mxu0 %v487_v2 }
  0x1e   : > { %p567_p13 = pnand %p566_p12, %p696_p4  ;;  %p572_p3 = por %p571_p2, %p570_p1 }
  0x20   : > { %p568_p0 = pneg %p567_p13 }
  0x21   : > { %318 = vmatpush.bf16.msra.mxu0 %v486_v3 }
  0x22   : > { %p573_p5 = pnand %p572_p3, %p568_p0 }
  0x24   : > { %477 = vmatmul.msk.bf16.vlgmr.msra.gmra.mxu0 %vm307_vm0, %v485_v4 }
  0xa1   : > { %v320_v6 = vpop.f32.mrf.mxu0 }
  0xa2   : > { %v321_v8 = vadd.f32 %v548_v5, %v320_v6 }
  0xa4   : > { %v327_v9 = vadd.f32 %v325_v7, %v321_v8 }
  0xa6   : > { %330 = vst.msk [vmem:[%s241_s12] sm:$0xff] %vm329_vm1, %v327_v9 }
  0xa9   : > { %v322_v10 = vpop.f32.mrf.mxu0 }
  0xaa   : > { %v323_v12 = vadd.f32 %v548_v5, %v322_v10 }
  0xac   : > { %v328_v13 = vadd.f32 %v326_v11, %v323_v12 }
  0xae   : > { %331 = vst.msk [vmem:[%s241_s12 + $0x8] sm:$0xff] %vm329_vm1, %v328_v13 }
  0xaf   : > { %576 = shalt.err (!%p573_p5)
}
  0xb0   : > { %s629_s24 = smov 128   ;;  %s630_s30 = smov 8  }
  0xb1   : > { %491 = dma.vmem_to_hbm [thread:$0]  (%p696_p4), %s348_s13, 256, %s350_s14, %s333_s21, %s629_s24, %s629_s24, %s630_s30  }
  0xb2 PF: > { %p497_p6 = scmp.ge.s32.totalorder %s627_s20, 2  ;;  %s364_s9 = sand.u32 1, %s607_s15  }
  0xb3   : > { %s365_s10 = scalar_lea.sflag [#allocation3], %s364_s9 }
  0xb4   : > { %p494_p7 = pnand %p497_p6, %p703_p8 }
  0xb6   : > { %p495_p9 = pneg %p494_p7 }
  0xb8   : > { %602 = dma.done.wait (%p495_p9), %s365_s10, 256  }
  0xb9   : > { %604 = vsyncadd (%p495_p9), %s365_s10, 4294967040  ;;  %s17_s20 = sadd.s32 1, %s627_s20   ;;  %s778_s15 = smov %s611_s16 }
  0xba   : > { %p14_p10 = scmp.ge.s32.totalorder %s17_s20, 4   ;;  %s779_s16 = smov %s615_s17 }
  0xbb   : > { %s780_s17 = smov %s709_s28  ;;  %s781_s18 = smov %s623_s19 }
  0xbc   : > { %s782_s19 = smov %s784_s23  ;;  %16 = sbr.rel (!%p14_p10) target bundleno = 4 (0x4), region = 74 }
  0xc1   :  { %371 = vsyncpa [#allocation3], 1 }
  0xc2   :  { %373 = vsyncpa [#allocation3 + $0x1], 1 }

</bundles_post_ra>
